<compile_context>
chip_gen: v7x
topology: tpu7x:2x2x1
jax: 0.10.0
libtpu: 0.0.40
codegen_flags: <defaults>
</compile_context>

<pallas_src>
import functools
import math
from typing import NamedTuple, Optional

import jax
import jax.numpy as jnp
from jax.experimental import pallas as pl
from jax.experimental.pallas import tpu as pltpu


class ActionOutput(NamedTuple):
    mu: jax.Array
    squashed_mu: jax.Array
    logstd: Optional[jax.Array]


def _round_up(n: int, m: int) -> int:
    return ((n + m - 1) // m) * m


# ----------------------------------------------------------------------------
# Kernel
# ----------------------------------------------------------------------------
def _residual_policy_kernel(x_ref, a_ref, w1x_ref, w1a_ref, b1_ref, w2_ref,
                            b2_ref, out_ref, *, scale):
    a = a_ref[...]
    # Encoder: h = relu(x @ W1_obs + a @ W1_act + b1)  (two MXU matmuls, f32 acc)
    h = jnp.dot(x_ref[...], w1x_ref[...], preferred_element_type=jnp.float32)
    h = h + jnp.dot(a, w1a_ref[...], preferred_element_type=jnp.float32)
    h = jnp.maximum(h + b1_ref[...], 0.0)
    # Policy head: residual = scale * tanh(h @ W2 + b2)  (tanh lands in EUP slot)
    fc = jnp.dot(h.astype(w2_ref.dtype), w2_ref[...],
                 preferred_element_type=jnp.float32) + b2_ref[...]
    residual = scale * jnp.tanh(fc)
    # Residual add + clamp, epilogue in f32
    out = jnp.clip(a.astype(jnp.float32) + residual, -1.0, 1.0)
    out_ref[...] = out.astype(out_ref.dtype)


# ----------------------------------------------------------------------------
# One-time parameter preparation (hoisted out of the per-call forward)
# ----------------------------------------------------------------------------
def prepare_params(w1, b1, w2, b2, obs_dim, *, param_dtype=jnp.float32):
    """Split / reshape parameters once.

    Expected layouts (PyTorch weights transposed to [in_features, out_features]):
      w1: [obs_dim + action_dim, hidden]   b1: [hidden]
      w2: [hidden, action_dim]             b2: [action_dim]
    """
    in_dim, hidden = w1.shape
    hidden2, act_dim = w2.shape
    if hidden2 != hidden:
        raise ValueError("w2 must be [hidden, action_dim] (PyTorch W.T layout)")
    if in_dim - obs_dim != act_dim:
        raise ValueError("w1 must be [obs_dim + action_dim, hidden]")
    if b1.size != hidden or b2.size != act_dim:
        raise ValueError("bias shapes inconsistent with weights")
    w1 = jnp.asarray(w1)
    w1x = w1[:obs_dim].astype(param_dtype)          # obs part of encoder weight
    w1a = w1[obs_dim:].astype(param_dtype)          # action part of encoder weight
    b1 = jnp.reshape(jnp.asarray(b1, jnp.float32), (1, hidden))   # f32 epilogue
    w2 = jnp.asarray(w2, param_dtype)
    b2 = jnp.reshape(jnp.asarray(b2, jnp.float32), (1, act_dim))
    return w1x, w1a, b1, w2, b2


# ----------------------------------------------------------------------------
# Tile selection
# ----------------------------------------------------------------------------
def _choose_tile_b(B, obs_dim, act_dim, hidden, *, t_max=1024,
                   vmem_budget_bytes=24 * 2**20):
    """Batch tile: big enough to amortize the ~0.35us/step pipeline overhead,
    balanced against B (no more than one tile of batch padding), >= 2 grid
    steps when B > 8 (v7x megacore), and clamped so the resident working set
    (double-buffered streams + weights + f32 `h`) stays under a conservative
    VMEM budget (v7x: 64 MiB physical; v5e: 16 MiB scoped default)."""
    n_tiles = max(1, math.ceil(B / t_max))
    if n_tiles == 1 and B > 8:
        n_tiles = 2
    tile_b = max(8, _round_up(math.ceil(B / n_tiles), 8))

    weights = (obs_dim + act_dim) * hidden + hidden * act_dim + hidden + act_dim

    def vmem_estimate(tb):
        streams = 2 * tb * (obs_dim + act_dim) + 2 * tb * act_dim
        return 4 * (streams + tb * hidden + 2 * weights)

    while tile_b > 8 and vmem_estimate(tile_b) > vmem_budget_bytes:
        tile_b = max(8, _round_up(tile_b // 2, 8))
    return tile_b


# ----------------------------------------------------------------------------
# Jitted forward
# ----------------------------------------------------------------------------
@functools.partial(
    jax.jit, static_argnames=("scale", "tile_b", "single_buffer_weights"))
def _forward(x, action, w1x, w1a, b1, w2, b2, *, scale, tile_b,
             single_buffer_weights):
    B, obs_dim = x.shape
    _, act_dim = action.shape
    hidden = w1x.shape[1]

    grid = (pl.cdiv(B, tile_b),)   # ragged last batch tile is masked by Pallas

    # Weights are VMEM-resident across the batch grid (constant index_map).
    # Buffered(1) drops their second pipeline buffer (halves weight VMEM).
    if single_buffer_weights:
        def weight_spec(shape):
            return pl.BlockSpec(shape, lambda i: (0, 0),
                                pipeline_mode=pl.Buffered(1))
    else:
        def weight_spec(shape):
            return pl.BlockSpec(shape, lambda i: (0, 0))

    itemsize = x.dtype.itemsize
    w_item = w1x.dtype.itemsize
    n_w = (obs_dim + act_dim) * hidden + hidden * act_dim
    n_b = hidden + act_dim
    w_buf = 1 if single_buffer_weights else 2
    vmem_est = (2 * tile_b * (obs_dim + act_dim) * itemsize        # input streams
                + 2 * tile_b * act_dim * action.dtype.itemsize     # output stream
                + tile_b * hidden * 4                              # f32 `h`
                + w_buf * (n_w * w_item + n_b * 4))                # resident weights
    vmem_limit = int(min(64 * 2**20, max(32 * 2**20, 2 * vmem_est)))

    cost = pl.CostEstimate(
        flops=2 * B * ((obs_dim + act_dim) * hidden + hidden * act_dim),
        transcendentals=B * act_dim,
        bytes_accessed=(x.size * itemsize
                        + action.size * action.dtype.itemsize
                        + B * act_dim * action.dtype.itemsize
                        + n_w * w_item + n_b * 4),
    )

    return pl.pallas_call(
        functools.partial(_residual_policy_kernel, scale=float(scale)),
        out_shape=jax.ShapeDtypeStruct((B, act_dim), action.dtype),
        grid=grid,
        in_specs=[
            pl.BlockSpec((tile_b, obs_dim), lambda i: (i, 0)),   # observation tile
            pl.BlockSpec((tile_b, act_dim), lambda i: (i, 0)),   # action tile (reused in-kernel)
            weight_spec((obs_dim, hidden)),                      # W1 (obs part)
            weight_spec((act_dim, hidden)),                      # W1 (action part)
            weight_spec((1, hidden)),                            # b1
            weight_spec((hidden, act_dim)),                      # W2
            weight_spec((1, act_dim)),                           # b2
        ],
        out_specs=pl.BlockSpec((tile_b, act_dim), lambda i: (i, 0)),
        compiler_params=pltpu.CompilerParams(
            dimension_semantics=("parallel",),   # batch tiles shard across TCs
            vmem_limit_bytes=vmem_limit,
        ),
        cost_estimate=cost,
    )(x, action, w1x, w1a, b1, w2, b2)


_SINGLE_BUFFER_WEIGHTS = True   # flipped once if pl.Buffered(1) is unsupported


def deterministic_residual_policy_forward(x, action, params, *, scale,
                                          tile_b=None):
    """x: [B, obs_dim], action: [B, action_dim], params = prepare_params(...)."""
    global _SINGLE_BUFFER_WEIGHTS
    w1x, w1a, b1, w2, b2 = params
    B, obs_dim = x.shape
    _, act_dim = action.shape
    hidden = w1x.shape[1]
    if (w1x.shape[0] != obs_dim or w1a.shape != (act_dim, hidden)
            or w2.shape != (hidden, act_dim)):
        raise ValueError("params inconsistent with x/action; use prepare_params()")

    if tile_b is None:
        tile_b = _choose_tile_b(B, obs_dim, act_dim, hidden)
    tile_b = max(8, _round_up(int(tile_b), 8))

    args = (x, action, w1x, w1a, b1, w2, b2)
    try:
        out = _forward(*args, scale=float(scale), tile_b=tile_b,
                       single_buffer_weights=_SINGLE_BUFFER_WEIGHTS)
    except Exception:
        if not _SINGLE_BUFFER_WEIGHTS:
            raise
        _SINGLE_BUFFER_WEIGHTS = False   # graceful fallback: default buffering
        out = _forward(*args, scale=float(scale), tile_b=tile_b,
                       single_buffer_weights=False)

    # mu and squashed_mu are the same tensor in DeterministicResidualPolicy.
    return ActionOutput(mu=out, squashed_mu=out, logstd=None)


# ----------------------------------------------------------------------------
# Demo / correctness check
# ----------------------------------------------------------------------------
def init_params(key, obs_dim, action_dim, hidden_size):
    """Deterministic synthetic params (PyTorch-Linear-like uniform init),
    stored [in_features, out_features] (== PyTorch W.T)."""
    in_dim = obs_dim + action_dim
    k1, k2, k3, k4 = jax.random.split(key, 4)
    lim1 = 1.0 / (in_dim ** 0.5)
    lim2 = 1.0 / (hidden_size ** 0.5)
    w1 = jax.random.uniform(k1, (in_dim, hidden_size), jnp.float32, -lim1, lim1)
    b1 = jax.random.uniform(k2, (hidden_size,), jnp.float32, -lim1, lim1)
    w2 = jax.random.uniform(k3, (hidden_size, action_dim), jnp.float32, -lim2, lim2)
    b2 = jax.random.uniform(k4, (action_dim,), jnp.float32, -lim2, lim2)
    return w1, b1, w2, b2


if __name__ == "__main__":
    key = jax.random.PRNGKey(0)
    obs_dim, hidden_size, action_size = 16, 32, 8
    scale = 0.5

    _, _, kp = jax.random.split(key, 3)
    w1, b1, w2, b2 = init_params(kp, obs_dim, action_size, hidden_size)
    params = prepare_params(w1, b1, w2, b2, obs_dim)   # one-time weight prep

    def reference(x, action):
        h = jnp.maximum(jnp.concatenate([x, action], -1) @ w1 + b1, 0.0)
        res = scale * jnp.tanh(h @ w2 + b2)
        return jnp.clip(action + res, -1.0, 1.0)

    for B in (16, 13):   # aligned batch + ragged last batch tile
        kx, ka = jax.random.split(jax.random.fold_in(key, B))
        x = jax.random.normal(kx, (B, obs_dim), jnp.float32)
        action = jnp.tanh(jax.random.normal(ka, (B, action_size), jnp.float32))

        out = deterministic_residual_policy_forward(x, action, params, scale=scale)
        jax.block_until_ready(out.mu)
        jax.block_until_ready(out.squashed_mu)

        ref = reference(x, action)
        assert out.logstd is None
        assert out.mu.shape == (B, action_size)
        assert jnp.allclose(out.mu, ref, atol=1e-5, rtol=1e-5)
        assert jnp.allclose(out.squashed_mu, ref, atol=1e-5, rtol=1e-5)

    print("KERNEL_OK")
</pallas_src>

<mosaic_0001>
module attributes {stable_mosaic.version = 11 : i64} {
  func.func @_residual_policy_kernel(%arg0: i32, %arg1: memref<8x16xf32, #tpu.memory_space<vmem>>, %arg2: memref<8x8xf32, #tpu.memory_space<vmem>>, %arg3: memref<16x32xf32, #tpu.memory_space<vmem>>, %arg4: memref<8x32xf32, #tpu.memory_space<vmem>>, %arg5: memref<1x32xf32, #tpu.memory_space<vmem>>, %arg6: memref<32x8xf32, #tpu.memory_space<vmem>>, %arg7: memref<1x8xf32, #tpu.memory_space<vmem>>, %arg8: memref<8x8xf32, #tpu.memory_space<vmem>>) attributes {dimension_semantics = [#tpu.dimension_semantics<parallel>], iteration_bounds = array<i64: 2>, scalar_prefetch = 0 : i64, scratch_operands = 0 : i64, tpu.core_type = #tpu.core_type<tc>, window_params = [{transform_indices = @transform_0, window_bounds = array<i64: 8, 16>}, {transform_indices = @transform_1, window_bounds = array<i64: 8, 8>}, {pipeline_mode = #tpu.pipeline_mode<synchronous>, transform_indices = @transform_2, window_bounds = array<i64: 16, 32>}, {pipeline_mode = #tpu.pipeline_mode<synchronous>, transform_indices = @transform_3, window_bounds = array<i64: 8, 32>}, {pipeline_mode = #tpu.pipeline_mode<synchronous>, transform_indices = @transform_4, window_bounds = array<i64: 1, 32>}, {pipeline_mode = #tpu.pipeline_mode<synchronous>, transform_indices = @transform_5, window_bounds = array<i64: 32, 8>}, {pipeline_mode = #tpu.pipeline_mode<synchronous>, transform_indices = @transform_6, window_bounds = array<i64: 1, 8>}, {transform_indices = @transform_7, window_bounds = array<i64: 8, 8>}]} {
    %c0 = arith.constant 0 : index
    %c0_0 = arith.constant 0 : index
    %0 = vector.load %arg2[%c0, %c0_0] : memref<8x8xf32, #tpu.memory_space<vmem>>, vector<8x8xf32>
    %c0_1 = arith.constant 0 : index
    %c0_2 = arith.constant 0 : index
    %1 = vector.load %arg1[%c0_1, %c0_2] : memref<8x16xf32, #tpu.memory_space<vmem>>, vector<8x16xf32>
    %c0_3 = arith.constant 0 : index
    %c0_4 = arith.constant 0 : index
    %2 = vector.load %arg3[%c0_3, %c0_4] : memref<16x32xf32, #tpu.memory_space<vmem>>, vector<16x32xf32>
    %cst = arith.constant dense<0.000000e+00> : vector<8x32xf32>
    %3 = tpu.matmul %1, %2, %cst {dimension_numbers = #tpu.dot_dimension_numbers<[1], [0], [0], [1], [0, 0, 1, 1], [], []>} : vector<8x16xf32>, vector<16x32xf32>, vector<8x32xf32> -> vector<8x32xf32>
    %c0_5 = arith.constant 0 : index
    %c0_6 = arith.constant 0 : index
    %4 = vector.load %arg4[%c0_5, %c0_6] : memref<8x32xf32, #tpu.memory_space<vmem>>, vector<8x32xf32>
    %cst_7 = arith.constant dense<0.000000e+00> : vector<8x32xf32>
    %5 = tpu.matmul %0, %4, %cst_7 {dimension_numbers = #tpu.dot_dimension_numbers<[1], [0], [0], [1], [0, 0, 1, 1], [], []>} : vector<8x8xf32>, vector<8x32xf32>, vector<8x32xf32> -> vector<8x32xf32>
    %6 = arith.addf %3, %5 : vector<8x32xf32>
    %c0_8 = arith.constant 0 : index
    %c0_9 = arith.constant 0 : index
    %7 = vector.load %arg5[%c0_8, %c0_9] : memref<1x32xf32, #tpu.memory_space<vmem>>, vector<1x32xf32>
    %8 = vector.broadcast %7 : vector<1x32xf32> to vector<8x32xf32>
    %9 = arith.addf %6, %8 : vector<8x32xf32>
    %cst_10 = arith.constant 0.000000e+00 : f32
    %10 = vector.broadcast %cst_10 : f32 to vector<8x32xf32>
    %11 = arith.maximumf %9, %10 : vector<8x32xf32>
    %c0_11 = arith.constant 0 : index
    %c0_12 = arith.constant 0 : index
    %12 = vector.load %arg6[%c0_11, %c0_12] : memref<32x8xf32, #tpu.memory_space<vmem>>, vector<32x8xf32>
    %cst_13 = arith.constant dense<0.000000e+00> : vector<8x8xf32>
    %13 = tpu.matmul %11, %12, %cst_13 {dimension_numbers = #tpu.dot_dimension_numbers<[1], [0], [0], [1], [0, 0, 1, 1], [], []>} : vector<8x32xf32>, vector<32x8xf32>, vector<8x8xf32> -> vector<8x8xf32>
    %c0_14 = arith.constant 0 : index
    %c0_15 = arith.constant 0 : index
    %14 = vector.load %arg7[%c0_14, %c0_15] : memref<1x8xf32, #tpu.memory_space<vmem>>, vector<1x8xf32>
    %15 = vector.broadcast %14 : vector<1x8xf32> to vector<8x8xf32>
    %16 = arith.addf %13, %15 : vector<8x8xf32>
    %17 = math.tanh %16 : vector<8x8xf32>
    %cst_16 = arith.constant 5.000000e-01 : f32
    %18 = vector.broadcast %cst_16 : f32 to vector<8x8xf32>
    %19 = arith.mulf %18, %17 : vector<8x8xf32>
    %20 = arith.addf %0, %19 : vector<8x8xf32>
    %cst_17 = arith.constant -1.000000e+00 : f32
    %cst_18 = arith.constant 1.000000e+00 : f32
    %21 = vector.broadcast %cst_17 : f32 to vector<8x8xf32>
    %22 = arith.maximumf %21, %20 : vector<8x8xf32>
    %23 = vector.broadcast %cst_18 : f32 to vector<8x8xf32>
    %24 = arith.minimumf %23, %22 : vector<8x8xf32>
    %c0_19 = arith.constant 0 : index
    %c0_20 = arith.constant 0 : index
    %25 = vector.load %arg8[%c0_19, %c0_20] : memref<8x8xf32, #tpu.memory_space<vmem>>, vector<8x8xf32>
    tpu.vector_store %arg8[%c0_19, %c0_20], %24 {strides = array<i32>} : memref<8x8xf32, #tpu.memory_space<vmem>>, vector<8x8xf32>,
    return
  }
  func.func @transform_0(%arg0: i32) -> (i32, i32) {
    %c0_i32 = arith.constant 0 : i32
    %c0_i32_0 = arith.constant 0 : i32
    return %arg0, %c0_i32 : i32, i32
  }
  func.func @transform_1(%arg0: i32) -> (i32, i32) {
    %c0_i32 = arith.constant 0 : i32
    %c0_i32_0 = arith.constant 0 : i32
    return %arg0, %c0_i32 : i32, i32
  }
  func.func @transform_2(%arg0: i32) -> (i32, i32) {
    %c0_i32 = arith.constant 0 : i32
    %c0_i32_0 = arith.constant 0 : i32
    %c0_i32_1 = arith.constant 0 : i32
    return %c0_i32, %c0_i32_0 : i32, i32
  }
  func.func @transform_3(%arg0: i32) -> (i32, i32) {
    %c0_i32 = arith.constant 0 : i32
    %c0_i32_0 = arith.constant 0 : i32
    %c0_i32_1 = arith.constant 0 : i32
    return %c0_i32, %c0_i32_0 : i32, i32
  }
  func.func @transform_4(%arg0: i32) -> (i32, i32) {
    %c0_i32 = arith.constant 0 : i32
    %c0_i32_0 = arith.constant 0 : i32
    %c0_i32_1 = arith.constant 0 : i32
    return %c0_i32, %c0_i32_0 : i32, i32
  }
  func.func @transform_5(%arg0: i32) -> (i32, i32) {
    %c0_i32 = arith.constant 0 : i32
    %c0_i32_0 = arith.constant 0 : i32
    %c0_i32_1 = arith.constant 0 : i32
    return %c0_i32, %c0_i32_0 : i32, i32
  }
  func.func @transform_6(%arg0: i32) -> (i32, i32) {
    %c0_i32 = arith.constant 0 : i32
    %c0_i32_0 = arith.constant 0 : i32
    %c0_i32_1 = arith.constant 0 : i32
    return %c0_i32, %c0_i32_0 : i32, i32
  }
  func.func @transform_7(%arg0: i32) -> (i32, i32) {
    %c0_i32 = arith.constant 0 : i32
    %c0_i32_0 = arith.constant 0 : i32
    return %arg0, %c0_i32 : i32, i32
  }
}

module attributes {stable_mosaic.version = 11 : i64} {
  func.func @_residual_policy_kernel(%arg0: i32, %arg1: memref<8x16xf32, #tpu.memory_space<vmem>>, %arg2: memref<8x8xf32, #tpu.memory_space<vmem>>, %arg3: memref<16x32xf32, #tpu.memory_space<vmem>>, %arg4: memref<8x32xf32, #tpu.memory_space<vmem>>, %arg5: memref<1x32xf32, #tpu.memory_space<vmem>>, %arg6: memref<32x8xf32, #tpu.memory_space<vmem>>, %arg7: memref<1x8xf32, #tpu.memory_space<vmem>>, %arg8: memref<8x8xf32, #tpu.memory_space<vmem>>) attributes {dimension_semantics = [#tpu.dimension_semantics<parallel>], iteration_bounds = array<i64: 2>, scalar_prefetch = 0 : i64, scratch_operands = 0 : i64, tpu.core_type = #tpu.core_type<tc>, window_params = [{transform_indices = @transform_0, window_bounds = array<i64: 8, 16>}, {transform_indices = @transform_1, window_bounds = array<i64: 8, 8>}, {pipeline_mode = #tpu.pipeline_mode<synchronous>, transform_indices = @transform_2, window_bounds = array<i64: 16, 32>}, {pipeline_mode = #tpu.pipeline_mode<synchronous>, transform_indices = @transform_3, window_bounds = array<i64: 8, 32>}, {pipeline_mode = #tpu.pipeline_mode<synchronous>, transform_indices = @transform_4, window_bounds = array<i64: 1, 32>}, {pipeline_mode = #tpu.pipeline_mode<synchronous>, transform_indices = @transform_5, window_bounds = array<i64: 32, 8>}, {pipeline_mode = #tpu.pipeline_mode<synchronous>, transform_indices = @transform_6, window_bounds = array<i64: 1, 8>}, {transform_indices = @transform_7, window_bounds = array<i64: 8, 8>}]} {
    %c0 = arith.constant 0 : index
    %c0_0 = arith.constant 0 : index
    %0 = vector.load %arg2[%c0, %c0_0] : memref<8x8xf32, #tpu.memory_space<vmem>>, vector<8x8xf32>
    %c0_1 = arith.constant 0 : index
    %c0_2 = arith.constant 0 : index
    %1 = vector.load %arg1[%c0_1, %c0_2] : memref<8x16xf32, #tpu.memory_space<vmem>>, vector<8x16xf32>
    %c0_3 = arith.constant 0 : index
    %c0_4 = arith.constant 0 : index
    %2 = vector.load %arg3[%c0_3, %c0_4] : memref<16x32xf32, #tpu.memory_space<vmem>>, vector<16x32xf32>
    %cst = arith.constant dense<0.000000e+00> : vector<8x32xf32>
    %3 = tpu.matmul %1, %2, %cst {dimension_numbers = #tpu.dot_dimension_numbers<[1], [0], [0], [1], [0, 0, 1, 1], [], []>} : vector<8x16xf32>, vector<16x32xf32>, vector<8x32xf32> -> vector<8x32xf32>
    %c0_5 = arith.constant 0 : index
    %c0_6 = arith.constant 0 : index
    %4 = vector.load %arg4[%c0_5, %c0_6] : memref<8x32xf32, #tpu.memory_space<vmem>>, vector<8x32xf32>
    %cst_7 = arith.constant dense<0.000000e+00> : vector<8x32xf32>
    %5 = tpu.matmul %0, %4, %cst_7 {dimension_numbers = #tpu.dot_dimension_numbers<[1], [0], [0], [1], [0, 0, 1, 1], [], []>} : vector<8x8xf32>, vector<8x32xf32>, vector<8x32xf32> -> vector<8x32xf32>
    %6 = arith.addf %3, %5 : vector<8x32xf32>
    %c0_8 = arith.constant 0 : index
    %c0_9 = arith.constant 0 : index
    %7 = vector.load %arg5[%c0_8, %c0_9] : memref<1x32xf32, #tpu.memory_space<vmem>>, vector<1x32xf32>
    %8 = vector.broadcast %7 : vector<1x32xf32> to vector<8x32xf32>
    %9 = arith.addf %6, %8 : vector<8x32xf32>
    %cst_10 = arith.constant 0.000000e+00 : f32
    %10 = vector.broadcast %cst_10 : f32 to vector<8x32xf32>
    %11 = arith.maximumf %9, %10 : vector<8x32xf32>
    %c0_11 = arith.constant 0 : index
    %c0_12 = arith.constant 0 : index
    %12 = vector.load %arg6[%c0_11, %c0_12] : memref<32x8xf32, #tpu.memory_space<vmem>>, vector<32x8xf32>
    %cst_13 = arith.constant dense<0.000000e+00> : vector<8x8xf32>
    %13 = tpu.matmul %11, %12, %cst_13 {dimension_numbers = #tpu.dot_dimension_numbers<[1], [0], [0], [1], [0, 0, 1, 1], [], []>} : vector<8x32xf32>, vector<32x8xf32>, vector<8x8xf32> -> vector<8x8xf32>
    %c0_14 = arith.constant 0 : index
    %c0_15 = arith.constant 0 : index
    %14 = vector.load %arg7[%c0_14, %c0_15] : memref<1x8xf32, #tpu.memory_space<vmem>>, vector<1x8xf32>
    %15 = vector.broadcast %14 : vector<1x8xf32> to vector<8x8xf32>
    %16 = arith.addf %13, %15 : vector<8x8xf32>
    %17 = math.tanh %16 : vector<8x8xf32>
    %cst_16 = arith.constant 5.000000e-01 : f32
    %18 = vector.broadcast %cst_16 : f32 to vector<8x8xf32>
    %19 = arith.mulf %18, %17 : vector<8x8xf32>
    %20 = arith.addf %0, %19 : vector<8x8xf32>
    %cst_17 = arith.constant -1.000000e+00 : f32
    %cst_18 = arith.constant 1.000000e+00 : f32
    %21 = vector.broadcast %cst_17 : f32 to vector<8x8xf32>
    %22 = arith.maximumf %21, %20 : vector<8x8xf32>
    %23 = vector.broadcast %cst_18 : f32 to vector<8x8xf32>
    %24 = arith.minimumf %23, %22 : vector<8x8xf32>
    %c0_19 = arith.constant 0 : index
    %c0_20 = arith.constant 0 : index
    %25 = vector.load %arg8[%c0_19, %c0_20] : memref<8x8xf32, #tpu.memory_space<vmem>>, vector<8x8xf32>
    tpu.vector_store %arg8[%c0_19, %c0_20], %24 {strides = array<i32>} : memref<8x8xf32, #tpu.memory_space<vmem>>, vector<8x8xf32>,
    return
  }
  func.func @transform_0(%arg0: i32) -> (i32, i32) {
    %c0_i32 = arith.constant 0 : i32
    %c0_i32_0 = arith.constant 0 : i32
    return %arg0, %c0_i32 : i32, i32
  }
  func.func @transform_1(%arg0: i32) -> (i32, i32) {
    %c0_i32 = arith.constant 0 : i32
    %c0_i32_0 = arith.constant 0 : i32
    return %arg0, %c0_i32 : i32, i32
  }
  func.func @transform_2(%arg0: i32) -> (i32, i32) {
    %c0_i32 = arith.constant 0 : i32
    %c0_i32_0 = arith.constant 0 : i32
    %c0_i32_1 = arith.constant 0 : i32
    return %c0_i32, %c0_i32_0 : i32, i32
  }
  func.func @transform_3(%arg0: i32) -> (i32, i32) {
    %c0_i32 = arith.constant 0 : i32
    %c0_i32_0 = arith.constant 0 : i32
    %c0_i32_1 = arith.constant 0 : i32
    return %c0_i32, %c0_i32_0 : i32, i32
  }
  func.func @transform_4(%arg0: i32) -> (i32, i32) {
    %c0_i32 = arith.constant 0 : i32
    %c0_i32_0 = arith.constant 0 : i32
    %c0_i32_1 = arith.constant 0 : i32
    return %c0_i32, %c0_i32_0 : i32, i32
  }
  func.func @transform_5(%arg0: i32) -> (i32, i32) {
    %c0_i32 = arith.constant 0 : i32
    %c0_i32_0 = arith.constant 0 : i32
    %c0_i32_1 = arith.constant 0 : i32
    return %c0_i32, %c0_i32_0 : i32, i32
  }
  func.func @transform_6(%arg0: i32) -> (i32, i32) {
    %c0_i32 = arith.constant 0 : i32
    %c0_i32_0 = arith.constant 0 : i32
    %c0_i32_1 = arith.constant 0 : i32
    return %c0_i32, %c0_i32_0 : i32, i32
  }
  func.func @transform_7(%arg0: i32) -> (i32, i32) {
    %c0_i32 = arith.constant 0 : i32
    %c0_i32_0 = arith.constant 0 : i32
    return %arg0, %c0_i32 : i32, i32
  }
}

</mosaic_0001>

<bundles_post_ra>
// kernel: _forward.1
= control target key start
LH: loop header
LB: loop body
LE: loop exit
PB: predicated region body
PF: predicated region fallthrough
CT: control target
= control target key end

     0   :  { %s731_s24 = smov 0   ;;  %s788_s0 = inlined_call_operand.vmem [shape: f32[16,16], index: 0, kind: input, shape index: {}]   ;;  %s789_s1 = inlined_call_operand.vmem [shape: f32[16,8], index: 1, kind: input, shape index: {}]   ;;  %s790_s2 = inlined_call_operand.vmem [shape: f32[16,32], index: 2, kind: input, shape index: {}]   ;;  %s791_s3 = inlined_call_operand.vmem [shape: f32[8,32], index: 3, kind: input, shape index: {}]   ;;  %s792_s4 = inlined_call_operand.vmem [shape: f32[1,32], index: 4, kind: input, shape index: {}]   ;;  %s793_s5 = inlined_call_operand.vmem [shape: f32[32,8], index: 5, kind: input, shape index: {}]   ;;  %s794_s6 = inlined_call_operand.vmem [shape: f32[1,8], index: 6, kind: input, shape index: {}]   ;;  %s795_s7 = inlined_call_operand.vmem [shape: f32[16,8], index: 7, kind: output, shape index: {}]  }
   0x1 LB: > { %s609_s25 = sadd.s32 4294967295, %s686_s24   ;;  %p613_p0 = scmp.ge.s32.totalorder %s686_s24, 1  ;;  %s686_s24 = sphi %s731_s24, %s17_s24  }
   0x2   : > { %p245_p1 = scmp.lt.s32.totalorder %s686_s24, 3 }
   0x4   : > { %p246_p2 = pnand %p613_p0, %p245_p1 }
   0x5   : > { %v295_v0 = vld [vmem:[%s791_s3] sm:$0xff] (!%p246_p2)  ;;  %p279_p3 = scmp.lt.s32.totalorder (!%p246_p2), %s609_s25, 1  ;;  %v688_v1 = vmov (!%p246_p2), 0.0   ;;  %vm689_vm0 = vmmov (!%p246_p2), 0   ;;  %v294_v3 = vld [vmem:[%s790_s2 + $0x8] sm:$0xff] (!%p246_p2)  ;;  %v690_v4 = vmov (!%p246_p2), 0.0|0.0  }
   0x6   : > { %249 = sbr.rel (%p246_p2) target bundleno = 471 (0x1d7), region = 48  ;;  %635 = vmatprep.subr.mxu1 (!%p246_p2), %v688_v1  ;;  %637 = vmatprep.mubr.msk.f32.mxu1 (!%p246_p2), %vm689_vm0, %v688_v1  ;;  %v293_v2 = vld [vmem:[%s790_s2] sm:$0xff] (!%p246_p2)  ;;  %vm296_vm1 = vcmask (!%p246_p2), 64512   ;;  %vm370_vm2 = vcmask (!%p246_p2), 130048   ;;  %v454_v9 = vld [vmem:[%s793_s5 + $0x8] sm:$0xff] (!%p246_p2)  ;;  %v455_v11 = vld [vmem:[%s793_s5 + $0x10] sm:$0xff] (!%p246_p2) }
   0x7   : > { %636 = vmatpush3.msra.mxu1 (!%p246_p2), %v295_v0  ;;  %661 = vmatprep.subr.bf16.mxu0 (!%p246_p2), %v690_v4  ;;  %v659_v5 = vpack.c.bf16 (!%p246_p2), %v294_v3, %v293_v2  ;;  %v453_v8 = vld [vmem:[%s793_s5] sm:$0xff] (!%p246_p2)  ;;  %v456_v12 = vld [vmem:[%s793_s5 + $0x18] sm:$0xff] (!%p246_p2)  ;;  %vm464_vm3 = vcmask (!%p246_p2), 261120  }
   0x8   : > { %658 = vmatprep.subr.bf16.mxu1 (!%p246_p2), %v690_v4  ;;  %655 = vmatprep.mubr.msk.f32.mxu0 (!%p246_p2), %vm689_vm0, %v688_v1  ;;  %v662_v10 = vpack.c.bf16 (!%p246_p2), %v454_v9, %v453_v8  ;;  %v665_v13 = vpack.c.bf16 (!%p246_p2), %v456_v12, %v455_v11  ;;  %v619_v17 = vld [vmem:[%s792_s4] ss:$0 sm:$0xff] (!%p246_p2) }
   0x9   : > { %v620_v22 = vld [vmem:[%s794_s6] ss:$0 sm:$0xff] (!%p246_p2) }
   0xa   : > { %663 = vmatpush3.bf16.msra.mxu0 (!%p246_p2), %v662_v10 }
   0xb   : > { %664 = vmatprep.subr.bf16.mxu0 (!%p246_p2), %v690_v4 }
   0xd   : > { %s797_s25 = smov (!%p279_p3, %s609_s25), 1 }
   0xe   : > { %s750_s9 = sshll.u32 %s797_s25, 3  ;;  %666 = vmatpush3.bf16.msra.mxu0 %v665_v13 }
   0xf   : > { %s286_s12 = scalar_lea.vmem %s789_s1, %s750_s9  ;;  %s282_s15 = scalar_lea.vmem %s788_s0, %s750_s9 }
  0x10   : > { %v291_v6 = vld [vmem:[%s286_s12] sm:$0xff]  ;;  %s290_s8 = scalar_lea.vmem %s795_s7, %s750_s9 }
  0x11   : > { %638 = vmatmul.mubr.msk.f32.vlgmr.msra.gmra.mrb[0].mxu1 %vm296_vm1, %v291_v6  ;;  %v292_v7 = vld [vmem:[%s282_s15] sm:$0xff] }
  0x12   : > { %660 = vmatpush3.bf16.msra.mxu1 %v659_v5  ;;  %644 = vmatprep.mubr.msk.f32.mxu1 %vm689_vm0, %v688_v1 }
  0x15   : > { %645 = vmatmul.mubr.msk.f32.vlgmr.msra.gmra.mrb[2].mxu1 %vm370_vm2, %v292_v7 }
  0xe4   : > { %v366_v14 = vpop.f32.mrb[0].mxu1 }
  0xe5   : > { %v639_v15 = vpop.f32.mrb[1].mxu1 }
  0xe8   : > { %v440_v16 = vpop.f32.mrb[2].mxu1 }
  0xe9   : > { %v441_v18 = vadd.f32 %v440_v16, %v366_v14  ;;  %v646_v19 = vpop.f32.mrb[3].mxu1 }
  0xeb   : > { %v451_v20 = vadd.f32 %v619_v17, %v441_v18 }
  0xed   : > { %v452_v21 = vmax.f32 %v451_v20, 0.0 }
  0xef   : > { %656 = vmatmul.mubr.msk.f32.vlgmr.msra.gmra.mrb[0].mxu0 %vm464_vm3, %v452_v21 }
 0x1c2   : > { %v534_v23 = vpop.f32.mrb[0].mxu0 }
 0x1c3   : > { %v535_v24 = vadd.f32 %v620_v22, %v534_v23  ;;  %v657_v25 = vpop.f32.mrb[1].mxu0 }
 0x1c5   : > { %678 = vtanh.f32 %v535_v24 }
 0x1cf   : > { %v679_v26 = vpop.eup %678 }
 0x1d0   : > { %v539_v27 = vmul.f32 0.5, %v679_v26 }
 0x1d2   : > { %v540_v28 = vadd.f32 %v539_v27, %v291_v6 }
 0x1d4   : > { %v622_v29 = vclamps-f32 %v540_v28, 1.0 }
 0x1d6   : > { %543 = vst.msk [vmem:[%s290_s8] sm:$0xff] %vm296_vm1, %v622_v29 }
 0x1d7 PF: > { %s17_s24 = sadd.s32 1, %s686_s24  }
 0x1d8   : > { %p14_p4 = scmp.ge.s32.totalorder %s17_s24, 4  }
 0x1da   :  { %16 = sbr.rel (!%p14_p4) target bundleno = 1 (0x1), region = 81 }

// kernel: _forward.1
= control target key start
LH: loop header
LB: loop body
LE: loop exit
PB: predicated region body
PF: predicated region fallthrough
CT: control target
= control target key end

     0   :  { %s731_s24 = smov 0   ;;  %s788_s0 = inlined_call_operand.vmem [shape: f32[16,16], index: 0, kind: input, shape index: {}]   ;;  %s789_s1 = inlined_call_operand.vmem [shape: f32[16,8], index: 1, kind: input, shape index: {}]   ;;  %s790_s2 = inlined_call_operand.vmem [shape: f32[16,32], index: 2, kind: input, shape index: {}]   ;;  %s791_s3 = inlined_call_operand.vmem [shape: f32[8,32], index: 3, kind: input, shape index: {}]   ;;  %s792_s4 = inlined_call_operand.vmem [shape: f32[1,32], index: 4, kind: input, shape index: {}]   ;;  %s793_s5 = inlined_call_operand.vmem [shape: f32[32,8], index: 5, kind: input, shape index: {}]   ;;  %s794_s6 = inlined_call_operand.vmem [shape: f32[1,8], index: 6, kind: input, shape index: {}]   ;;  %s795_s7 = inlined_call_operand.vmem [shape: f32[16,8], index: 7, kind: output, shape index: {}]  }
   0x1 LB: > { %s609_s25 = sadd.s32 4294967295, %s686_s24   ;;  %p613_p0 = scmp.ge.s32.totalorder %s686_s24, 1  ;;  %s686_s24 = sphi %s731_s24, %s17_s24  }
   0x2   : > { %p245_p1 = scmp.lt.s32.totalorder %s686_s24, 3 }
   0x4   : > { %p246_p2 = pnand %p613_p0, %p245_p1 }
   0x5   : > { %v295_v0 = vld [vmem:[%s791_s3] sm:$0xff] (!%p246_p2)  ;;  %p279_p3 = scmp.lt.s32.totalorder (!%p246_p2), %s609_s25, 1  ;;  %v688_v1 = vmov (!%p246_p2), 0.0   ;;  %vm689_vm0 = vmmov (!%p246_p2), 0   ;;  %v294_v3 = vld [vmem:[%s790_s2 + $0x8] sm:$0xff] (!%p246_p2)  ;;  %v690_v4 = vmov (!%p246_p2), 0.0|0.0  }
   0x6   : > { %249 = sbr.rel (%p246_p2) target bundleno = 471 (0x1d7), region = 48  ;;  %635 = vmatprep.subr.mxu1 (!%p246_p2), %v688_v1  ;;  %637 = vmatprep.mubr.msk.f32.mxu1 (!%p246_p2), %vm689_vm0, %v688_v1  ;;  %v293_v2 = vld [vmem:[%s790_s2] sm:$0xff] (!%p246_p2)  ;;  %vm296_vm1 = vcmask (!%p246_p2), 64512   ;;  %vm370_vm2 = vcmask (!%p246_p2), 130048   ;;  %v454_v9 = vld [vmem:[%s793_s5 + $0x8] sm:$0xff] (!%p246_p2)  ;;  %v455_v11 = vld [vmem:[%s793_s5 + $0x10] sm:$0xff] (!%p246_p2) }
   0x7   : > { %636 = vmatpush3.msra.mxu1 (!%p246_p2), %v295_v0  ;;  %661 = vmatprep.subr.bf16.mxu0 (!%p246_p2), %v690_v4  ;;  %v659_v5 = vpack.c.bf16 (!%p246_p2), %v294_v3, %v293_v2  ;;  %v453_v8 = vld [vmem:[%s793_s5] sm:$0xff] (!%p246_p2)  ;;  %v456_v12 = vld [vmem:[%s793_s5 + $0x18] sm:$0xff] (!%p246_p2)  ;;  %vm464_vm3 = vcmask (!%p246_p2), 261120  }
   0x8   : > { %658 = vmatprep.subr.bf16.mxu1 (!%p246_p2), %v690_v4  ;;  %655 = vmatprep.mubr.msk.f32.mxu0 (!%p246_p2), %vm689_vm0, %v688_v1  ;;  %v662_v10 = vpack.c.bf16 (!%p246_p2), %v454_v9, %v453_v8  ;;  %v665_v13 = vpack.c.bf16 (!%p246_p2), %v456_v12, %v455_v11  ;;  %v619_v17 = vld [vmem:[%s792_s4] ss:$0 sm:$0xff] (!%p246_p2) }
   0x9   : > { %v620_v22 = vld [vmem:[%s794_s6] ss:$0 sm:$0xff] (!%p246_p2) }
   0xa   : > { %663 = vmatpush3.bf16.msra.mxu0 (!%p246_p2), %v662_v10 }
   0xb   : > { %664 = vmatprep.subr.bf16.mxu0 (!%p246_p2), %v690_v4 }
   0xd   : > { %s797_s25 = smov (!%p279_p3, %s609_s25), 1 }
   0xe   : > { %s750_s9 = sshll.u32 %s797_s25, 3  ;;  %666 = vmatpush3.bf16.msra.mxu0 %v665_v13 }
   0xf   : > { %s286_s12 = scalar_lea.vmem %s789_s1, %s750_s9  ;;  %s282_s15 = scalar_lea.vmem %s788_s0, %s750_s9 }
  0x10   : > { %v291_v6 = vld [vmem:[%s286_s12] sm:$0xff]  ;;  %s290_s8 = scalar_lea.vmem %s795_s7, %s750_s9 }
  0x11   : > { %638 = vmatmul.mubr.msk.f32.vlgmr.msra.gmra.mrb[0].mxu1 %vm296_vm1, %v291_v6  ;;  %v292_v7 = vld [vmem:[%s282_s15] sm:$0xff] }
  0x12   : > { %660 = vmatpush3.bf16.msra.mxu1 %v659_v5  ;;  %644 = vmatprep.mubr.msk.f32.mxu1 %vm689_vm0, %v688_v1 }
  0x15   : > { %645 = vmatmul.mubr.msk.f32.vlgmr.msra.gmra.mrb[2].mxu1 %vm370_vm2, %v292_v7 }
  0xe4   : > { %v366_v14 = vpop.f32.mrb[0].mxu1 }
  0xe5   : > { %v639_v15 = vpop.f32.mrb[1].mxu1 }
  0xe8   : > { %v440_v16 = vpop.f32.mrb[2].mxu1 }
  0xe9   : > { %v441_v18 = vadd.f32 %v440_v16, %v366_v14  ;;  %v646_v19 = vpop.f32.mrb[3].mxu1 }
  0xeb   : > { %v451_v20 = vadd.f32 %v619_v17, %v441_v18 }
  0xed   : > { %v452_v21 = vmax.f32 %v451_v20, 0.0 }
  0xef   : > { %656 = vmatmul.mubr.msk.f32.vlgmr.msra.gmra.mrb[0].mxu0 %vm464_vm3, %v452_v21 }
 0x1c2   : > { %v534_v23 = vpop.f32.mrb[0].mxu0 }
 0x1c3   : > { %v535_v24 = vadd.f32 %v620_v22, %v534_v23  ;;  %v657_v25 = vpop.f32.mrb[1].mxu0 }
 0x1c5   : > { %678 = vtanh.f32 %v535_v24 }
 0x1cf   : > { %v679_v26 = vpop.eup %678 }
 0x1d0   : > { %v539_v27 = vmul.f32 0.5, %v679_v26 }
 0x1d2   : > { %v540_v28 = vadd.f32 %v539_v27, %v291_v6 }
 0x1d4   : > { %v622_v29 = vclamps-f32 %v540_v28, 1.0 }
 0x1d6   : > { %543 = vst.msk [vmem:[%s290_s8] sm:$0xff] %vm296_vm1, %v622_v29 }
 0x1d7 PF: > { %s17_s24 = sadd.s32 1, %s686_s24  }
 0x1d8   : > { %p14_p4 = scmp.ge.s32.totalorder %s17_s24, 4  }
 0x1da   :  { %16 = sbr.rel (!%p14_p4) target bundleno = 1 (0x1), region = 81 }

</bundles_post_ra>
